<compile_context>
chip_gen: v7x
topology: tpu7x:2x2x1
jax: 0.10.0
libtpu: 0.0.40
codegen_flags: <defaults>
</compile_context>

<pallas_src>
import functools

import jax
import jax.numpy as jnp
from jax.experimental import pallas as pl
from jax.experimental.pallas import tpu as pltpu


def _patch_embed_kernel(patches_ref, wt_ref, add_ref, out_ref):
    # patches_ref: (M, K)  bf16 -- M = tb*(N+1) token rows; each image's cls
    #                              slot (its row 0) is all zeros.
    # wt_ref:      (K, Em) bf16 -- transposed conv weight (grid-constant).
    # add_ref:     (M, Em) f32  -- fused additive rows (grid-constant):
    #                              cls+pos[0] on cls slots, pos[t]+conv_b else.
    # out_ref:     (M, Em) f32  -- full token rows for this batch tile.
    # Single MXU matmul (f32 accumulation) + one VPU add, one aligned store.
    out_ref[...] = (
        jnp.dot(patches_ref[...], wt_ref[...], preferred_element_type=jnp.float32)
        + add_ref[...]
    )


def _choose_batch_tile(B, tokens, K, Em):
    """Images per grid step (tokens = N+1 rows per image, incl. the cls slot).

    Targets a per-step patches block of >= 1 MiB and M = tb*tokens >= 512 rows
    (feeds the 256x256 MXUs on v6e/v7x and keeps DMA blocks in the ~85%-of-
    roofline regime), under a VMEM budget that fits v7x's 64 MiB/core, while
    keeping an even grid with >= 4 steps (>= 2 per v7x TensorCore) when the
    batch allows it.  On v5e the same sizes are already comfortably >= 128.
    """
    budget = 24 * 1024 * 1024  # conservative across v5e/v6e/v7x

    def vmem_bytes(tb):
        m = tb * tokens
        return (2 * m * K * 2      # patches tile (bf16), double-buffered
                + 2 * m * Em * 4   # output tile (f32), double-buffered
                + K * Em * 2       # weight (grid-constant)
                + m * Em * 4)      # add rows (grid-constant)

    best = 1
    for tb in range(1, B + 1):
        if B % tb:
            continue
        if vmem_bytes(tb) > budget:
            break                      # tb only grows from here
        steps = B // tb
        if B >= 8 and (steps < 4 or steps % 2):
            continue                   # keep an even, >= 4-step grid (v7x)
        if 1 < B < 8 and steps < 2:
            continue                   # keep the pipeline non-degenerate
        best = tb
        if tb * tokens >= 512 and tb * tokens * K * 2 >= (1 << 20):
            break                      # MXU M-dim and DMA block both well fed
    return best


@functools.partial(jax.jit, static_argnums=(5,))
def embedding_forward(x, conv_w, conv_b, cls, pos, patch_size):
    """x: (B, C, H, W) f32. Returns (B, N+1, Em) f32 (row 0 = cls token)."""
    B, C, H, W = x.shape
    ph, pw = patch_size
    Em = conv_w.shape[0]
    gh, gw = H // ph, W // pw
    N = gh * gw
    K = C * ph * pw
    tokens = N + 1

    tb = _choose_batch_tile(B, tokens, K, Em)
    G = B // tb
    M = tb * tokens

    # Patch extraction (+ zero cls-slot row + bf16 cast): pure reshape /
    # transpose / pad, kept inside this jit and declared fusible into the
    # Pallas operand (allow_input_fusion) so XLA does not have to materialize
    # a standalone HBM round trip of the image tensor.
    patches = x.reshape(B, C, gh, ph, gw, pw).transpose(0, 2, 4, 1, 3, 5)
    patches = patches.reshape(B, N, K)
    patches = jnp.pad(patches, ((0, 0), (1, 0), (0, 0)))      # cls slot row = 0
    patches = patches.astype(jnp.bfloat16).reshape(G, M, K)   # free, contiguous

    # bf16 matmul operands, f32 accumulation inside the kernel.
    wt = conv_w.reshape(Em, K).T.astype(jnp.bfloat16)          # (K, Em)

    # Fused additive rows (grid-constant): the cls slot's patch row is zero, so
    # its output is exactly cls + pos[0]; patch rows get pos[t] + conv bias.
    add_rows = jnp.concatenate(
        [cls.reshape(1, Em) + pos[0:1, :], pos[1:, :] + conv_b[None, :]], axis=0)
    add_rows = jnp.tile(add_rows, (tb, 1)).astype(jnp.float32)  # (M, Em)

    # Explicit VMEM budget (review: v7x has only 64 MiB/core, default scoped
    # limit 32 MiB) -- grid constants counted once, streamed tiles twice.
    vmem_needed = (2 * M * K * 2 + 2 * M * Em * 4 + K * Em * 2 + M * Em * 4)
    vmem_limit = max(2 * vmem_needed, 32 * 1024 * 1024)
    vmem_limit = min(vmem_limit, 64 * 1024 * 1024)
    vmem_limit = int(max(vmem_limit, vmem_needed + (4 << 20)))

    cost = pl.CostEstimate(
        flops=2 * B * tokens * K * Em,
        transcendentals=0,
        bytes_accessed=(B * tokens * K * 2 + K * Em * 2 + M * Em * 4
                        + B * tokens * Em * 4),
    )

    # NOTE: Em should be a multiple of 128 for lane-dense (unmasked) output
    # stores in production ViT shapes; the toy Em=32 below is a test-only shape.
    out = pl.pallas_call(
        _patch_embed_kernel,
        out_shape=jax.ShapeDtypeStruct((G, M, Em), jnp.float32),
        grid_spec=pltpu.PrefetchScalarGridSpec(
            num_scalar_prefetch=0,
            grid=(G,),
            in_specs=[
                pl.BlockSpec((None, M, K), lambda g: (g, 0, 0)),   # per-step tile
                pl.BlockSpec((K, Em), lambda g: (0, 0)),           # grid-constant
                pl.BlockSpec((M, Em), lambda g: (0, 0)),           # grid-constant
            ],
            out_specs=pl.BlockSpec((None, M, Em), lambda g: (g, 0, 0)),
        ),
        compiler_params=pltpu.CompilerParams(
            dimension_semantics=("parallel",),
            allow_input_fusion=[True, False, False],
            vmem_limit_bytes=vmem_limit,
        ),
        cost_estimate=cost,
    )(patches, wt, add_rows)

    # Free contiguous reshape: (G, tb*(N+1), Em) -> (B, N+1, Em).
    return out.reshape(B, tokens, Em)


def embedding_reference(x, conv_w, conv_b, cls, pos, patch_size):
    """Pure-JAX f32 reference mirroring the PyTorch forward."""
    B, C, H, W = x.shape
    ph, pw = patch_size
    Em = conv_w.shape[0]
    gh, gw = H // ph, W // pw
    N = gh * gw
    K = C * ph * pw
    patches = x.reshape(B, C, gh, ph, gw, pw).transpose(0, 2, 4, 1, 3, 5)
    patches = patches.reshape(B, N, K)
    proj = patches @ conv_w.reshape(Em, K).T + conv_b[None, None, :]   # (B,N,Em)
    cls_tok = jnp.broadcast_to(cls.reshape(1, 1, Em), (B, 1, Em))
    return jnp.concatenate([cls_tok, proj], axis=1) + pos[None, :, :]


if __name__ == "__main__":
    # Small shapes consistent with the module: B=2, C=4, 16x16 image,
    # 4x4 patches, Em=32 -> N=16, K=64, tokens=17.
    B, C, H, W = 2, 4, 16, 16
    patch_size = (4, 4)
    Em = 32
    N = (H // patch_size[0]) * (W // patch_size[1])

    key = jax.random.PRNGKey(0)
    kx, kw, kb, kc, kp = jax.random.split(key, 5)
    x = jax.random.normal(kx, (B, C, H, W), dtype=jnp.float32)
    conv_w = jax.random.normal(
        kw, (Em, C, patch_size[0], patch_size[1]), dtype=jnp.float32) * 0.02
    conv_b = jax.random.normal(kb, (Em,), dtype=jnp.float32) * 0.02
    cls = jax.random.normal(kc, (1, 1, Em), dtype=jnp.float32)
    pos = jax.random.normal(kp, (N + 1, Em), dtype=jnp.float32)

    out = embedding_forward(x, conv_w, conv_b, cls, pos, patch_size)
    out = jax.block_until_ready(out)

    ref = embedding_reference(x, conv_w, conv_b, cls, pos, patch_size)
    assert out.shape == (B, N + 1, Em), out.shape
    # bf16 matmul operands (f32 accumulation) -> loosened tolerance vs f32 ref.
    assert jnp.allclose(out, ref, atol=2e-2, rtol=2e-2), "mismatch vs reference"

    print("KERNEL_OK")
</pallas_src>

<mosaic_0001>
module attributes {stable_mosaic.version = 11 : i64} {
  func.func @_patch_embed_kernel(%arg0: i32, %arg1: memref<1x17x64xbf16, #tpu.memory_space<vmem>>, %arg2: memref<64x32xbf16, #tpu.memory_space<vmem>>, %arg3: memref<17x32xf32, #tpu.memory_space<vmem>>, %arg4: memref<1x17x32xf32, #tpu.memory_space<vmem>>) attributes {dimension_semantics = [#tpu.dimension_semantics<parallel>], iteration_bounds = array<i64: 2>, scalar_prefetch = 0 : i64, scratch_operands = 0 : i64, tpu.core_type = #tpu.core_type<tc>, window_params = [{transform_indices = @transform_0, window_bounds = array<i64: 1, 17, 64>}, {pipeline_mode = #tpu.pipeline_mode<synchronous>, transform_indices = @transform_1, window_bounds = array<i64: 64, 32>}, {pipeline_mode = #tpu.pipeline_mode<synchronous>, transform_indices = @transform_2, window_bounds = array<i64: 17, 32>}, {transform_indices = @transform_3, window_bounds = array<i64: 1, 17, 32>}]} {
    %c0 = arith.constant 0 : index
    %c0_0 = arith.constant 0 : index
    %c0_1 = arith.constant 0 : index
    %0 = vector.load %arg1[%c0, %c0_0, %c0_1] : memref<1x17x64xbf16, #tpu.memory_space<vmem>>, vector<1x17x64xbf16>
    %1 = vector.shape_cast %0 : vector<1x17x64xbf16> to vector<17x64xbf16>
    %c0_2 = arith.constant 0 : index
    %c0_3 = arith.constant 0 : index
    %2 = vector.load %arg2[%c0_2, %c0_3] : memref<64x32xbf16, #tpu.memory_space<vmem>>, vector<64x32xbf16>
    %cst = arith.constant dense<0.000000e+00> : vector<17x32xf32>
    %3 = tpu.matmul %1, %2, %cst {dimension_numbers = #tpu.dot_dimension_numbers<[1], [0], [0], [1], [0, 0, 1, 1], [], []>} : vector<17x64xbf16>, vector<64x32xbf16>, vector<17x32xf32> -> vector<17x32xf32>
    %c0_4 = arith.constant 0 : index
    %c0_5 = arith.constant 0 : index
    %4 = vector.load %arg3[%c0_4, %c0_5] : memref<17x32xf32, #tpu.memory_space<vmem>>, vector<17x32xf32>
    %5 = arith.addf %3, %4 : vector<17x32xf32>
    %c0_6 = arith.constant 0 : index
    %c0_7 = arith.constant 0 : index
    %c0_8 = arith.constant 0 : index
    %6 = vector.load %arg4[%c0_6, %c0_7, %c0_8] : memref<1x17x32xf32, #tpu.memory_space<vmem>>, vector<1x17x32xf32>
    %7 = vector.shape_cast %6 : vector<1x17x32xf32> to vector<17x32xf32>
    %8 = vector.shape_cast %5 : vector<17x32xf32> to vector<1x17x32xf32>
    tpu.vector_store %arg4[%c0_6, %c0_7, %c0_8], %8 {strides = array<i32>} : memref<1x17x32xf32, #tpu.memory_space<vmem>>, vector<1x17x32xf32>,
    return
  }
  func.func @transform_0(%arg0: i32) -> (i32, i32, i32) {
    %c0_i32 = arith.constant 0 : i32
    %c0_i32_0 = arith.constant 0 : i32
    %c0_i32_1 = arith.constant 0 : i32
    return %arg0, %c0_i32, %c0_i32_0 : i32, i32, i32
  }
  func.func @transform_1(%arg0: i32) -> (i32, i32) {
    %c0_i32 = arith.constant 0 : i32
    %c0_i32_0 = arith.constant 0 : i32
    %c0_i32_1 = arith.constant 0 : i32
    return %c0_i32, %c0_i32_0 : i32, i32
  }
  func.func @transform_2(%arg0: i32) -> (i32, i32) {
    %c0_i32 = arith.constant 0 : i32
    %c0_i32_0 = arith.constant 0 : i32
    %c0_i32_1 = arith.constant 0 : i32
    return %c0_i32, %c0_i32_0 : i32, i32
  }
  func.func @transform_3(%arg0: i32) -> (i32, i32, i32) {
    %c0_i32 = arith.constant 0 : i32
    %c0_i32_0 = arith.constant 0 : i32
    %c0_i32_1 = arith.constant 0 : i32
    return %arg0, %c0_i32, %c0_i32_0 : i32, i32, i32
  }
}

</mosaic_0001>

<bundles_post_ra>
// kernel: embedding_forward.2
= control target key start
LH: loop header
LB: loop body
LE: loop exit
PB: predicated region body
PF: predicated region fallthrough
CT: control target
= control target key end

     0   :  { %s493_s17 = smov 0   ;;  %s539_s0 = inlined_call_operand.vmem [shape: bf16[64,32], index: 0, kind: input, shape index: {}]   ;;  %s540_s1 = inlined_call_operand.vmem [shape: f32[17,32], index: 1, kind: input, shape index: {}]   ;;  %s541_s2 = inlined_call_operand.vmem [shape: bf16[2,16,64], index: 2, kind: input, shape index: {}]   ;;  %s542_s3 = inlined_call_operand.<no memory space> [shape: bf16[], index: 3, kind: input, shape index: {}]   ;;  %s543_s4 = inlined_call_operand.vmem [shape: f32[2,17,32], index: 4, kind: output, shape index: {}]  }
   0x1   :  { %v9_v0 = vstv %s542_s3 }
   0x2   :  { %v491_v1 = vunpack.i.l.bf16 %v9_v0 }
   0x3 LB: > { %s398_s18 = sadd.s32 4294967295, %s460_s17   ;;  %p402_p0 = scmp.ge.s32.totalorder %s460_s17, 1  ;;  %s460_s17 = sphi %s493_s17, %s19_s17  }
   0x4   : > { %p144_p1 = scmp.lt.s32.totalorder %s460_s17, 3 }
   0x6   : > { %p145_p2 = pnand %p402_p0, %p144_p1 }
   0x8   : > { %148 = sbr.rel (%p145_p2) target bundleno = 256 (0x100), region = 32 }
   0xf   : > { %v448_v2 = vld [vmem:[%s539_s0] sm:$0xff]   ;;  %p169_p3 = scmp.lt.s32.totalorder %s398_s18, 1  ;;  %v195_v3 = vlaneseq  ;;  %v449_v4 = vld [vmem:[%s539_s0 + $0x8] sm:$0xff]   ;;  %v450_v6 = vld [vmem:[%s539_s0 + $0x10] sm:$0xff]   ;;  %vm200_vm1 = vcmask 1046528   ;;  %v462_v19 = vmov 0.0  }
  0x10   : > { %426 = vmatprep.subr.bf16.mxu0 %v448_v2  ;;  %v451_v10 = vld [vmem:[%s539_s0 + $0x18] sm:$0xff]   ;;  %vm276_vm2 = vcmask 523264   ;;  %v243_v25 = vld [vmem:[%s540_s1 + $0x10] sm:$0x1]  ;;  %v241_v26 = vld [vmem:[%s540_s1] sm:$0xff]  ;;  %vm334_vm3 = vcmask 253952  }
  0x11   : > { %s545_s18 = smov (!%p169_p3, %s398_s18), 1  ;;  %427 = vmatpush3.bf16.msra.mxu0 %v448_v2  ;;  %v196_v5 = vand.u32 127, %v195_v3  ;;  %vm331_vm4 = vcmask 261120   ;;  %v242_v30 = vld [vmem:[%s540_s1 + $0x8] sm:$0xff] }
  0x12   : > { %428 = vmatprep.subr.bf16.mxu0 %v449_v4  ;;  %s419_s24 = sshll.u32 %s545_s18, 3  ;;  %s438_s30 = smul.u32 24, %s545_s18 }
  0x13   : > { %s369_s27 = scalar_lea.vmem %s541_s2, %s419_s24  ;;  %vm198_vm0 = vcmp.lt.s32.totalorder %v196_v5, 64 }
  0x14   : > { %v407_v7 = vld [vmem:[%s369_s27] sm:$0xff]   ;;  %s179_s11 = scalar_lea.vmem %s543_s4, %s438_s30 }
  0x15   : > { %429 = vmatpush3.bf16.msra.mxu0 %v449_v4  ;;  %v193_v8 = vunpack.c.l.bf16 %v407_v7  ;;  %v208_v9 = vunpack.c.h.bf16 %v407_v7 }
  0x16   : > { %430 = vmatprep.subr.bf16.mxu0 %v450_v6 }
  0x17   : > { %v199_v11 = vsel %vm198_vm0, %v193_v8, %v491_v1  ;;  %v214_v12 = vsel %vm198_vm0, %v208_v9, %v491_v1 }
  0x18   : > { %v201_v13 = vsel %vm200_vm1, %v199_v11, %v491_v1  ;;  %v216_v14 = vsel %vm200_vm1, %v214_v12, %v199_v11  ;;  %v223_v15 = vsel %vm200_vm1, %v491_v1, %v214_v12 }
  0x19   : > { %431 = vmatpush3.bf16.msra.mxu0 %v450_v6  ;;  %v202_v16 = vrot.slane %v201_v13, 7  ;;  %v217_v17 = vrot.slane %v216_v14, 7  ;;  %v224_v18 = vrot.slane %v223_v15, 7 }
  0x1a   : > { %432 = vmatprep.subr.bf16.mxu0 %v451_v10 }
  0x1b   : > { %v203_v20 = vpack.c.bf16 %v462_v19, %v202_v16  ;;  %v219_v21 = vpack.c.bf16 %v462_v19, %v217_v17  ;;  %v226_v22 = vpack.c.bf16 %v462_v19, %v224_v18 }
  0x1d   : > { %433 = vmatpush3.bf16.msra.mxu0 %v451_v10  ;;  %205 = vst [vmem:[#allocation7] sm:$0xf] %v203_v20  ;;  %221 = vst [vmem:[#allocation7 + $0x4] sm:$0xf] %v219_v21 }
  0x1e   : > { %228 = vst [vmem:[#allocation7 + $0x8] sm:$0xf] %v226_v22 }
  0x24   : > { %v452_v23 = vld [vmem:[#allocation7] sm:$0xff]  }
  0x25   : > { %v453_v24 = vld [vmem:[#allocation7 + $0x8] ss:$0 sps:$4 sm:$0x11]   ;;  %434 = vmatprep.mubr.msk.bf16.mxu0 %vm276_vm2, %v452_v23 }
  0x26   : > { %435 = vmatmul.mubr.msk.bf16.vlgmr.msra.gmra.mrb[0].mxu0 %vm276_vm2, %v453_v24 }
  0xf9   : > { %v436_v27 = vpop.f32.mrb[0].mxu0 }
  0xfa   : > { %v326_v28 = vadd.f32 %v436_v27, %v243_v25  ;;  %v317_v29 = vpop.f32.mrb[1].mxu0 }
  0xfb   : > { %v318_v31 = vadd.f32 %v317_v29, %v241_v26  ;;  %v437_v32 = vpop.f32.mrb[2].mxu0 }
  0xfc   : > { %335 = vst.msk [vmem:[%s179_s11 + $0x10] sm:$0x1] %vm334_vm3, %v326_v28  ;;  %v320_v33 = vpop.f32.mrb[3].mxu0 }
  0xfd   : > { %332 = vst.msk [vmem:[%s179_s11] sm:$0xff] %vm331_vm4, %v318_v31  ;;  %v321_v34 = vadd.f32 %v320_v33, %v242_v30 }
  0xff   : > { %333 = vst.msk [vmem:[%s179_s11 + $0x8] sm:$0xff] %vm331_vm4, %v321_v34 }
 0x100 PF: > { %s19_s17 = sadd.s32 1, %s460_s17  }
 0x101   : > { %p16_p4 = scmp.ge.s32.totalorder %s19_s17, 4  }
 0x103   :  { %18 = sbr.rel (!%p16_p4) target bundleno = 3 (0x3), region = 66 }

</bundles_post_ra>
